<compile_context>
chip_gen: v7x
topology: tpu7x:2x2x1
jax: 0.10.0
libtpu: 0.0.40
codegen_flags: <defaults>
</compile_context>

<pallas_src>
import functools

import jax
import jax.numpy as jnp
from jax.experimental import pallas as pl
from jax.experimental.pallas import tpu as pltpu

_LANE = 128
_BF16_SUBLANE = 16  # bf16 packs 16 rows per (8,128) f32-equivalent vreg tile


def _round_up(x, m):
    return (x + m - 1) // m * m


def _vmem_capacity_bytes():
    """Per-TensorCore VMEM capacity; conservative fallback if unavailable."""
    try:
        return int(pltpu.get_tpu_info().vmem_capacity_bytes)
    except Exception:
        return 64 * 1024 * 1024


def _const_spec(block_shape, index_map):
    """BlockSpec for a grid-constant operand; single-buffered when supported."""
    if hasattr(pl, "Buffered"):
        try:
            return pl.BlockSpec(block_shape, index_map, pipeline_mode=pl.Buffered(1))
        except Exception:
            pass
    return pl.BlockSpec(block_shape, index_map)


def _encoder_head_kernel(x_ref, w_ref, b_ref, o_ref):
    """Fused: global average pool over spatial -> flatten -> linear embed.

    x_ref: (TB, S, C)  bf16  NHWC feature map (spatial flattened), C on lanes
    w_ref: (C, Ep)     bf16  Linear weight^T, pre-scaled by 1/S, E padded
    b_ref: (1, Ep)     f32   Linear bias (E padded to lane width)
    o_ref: (TB, Ep)    f32   embedded features
    """
    # AdaptiveAvgPool2d((1,1)) + .view(B, -1): mean over spatial positions.
    # The 1/S scale is folded into w_ref; pool accumulates in f32 on the VPU.
    pooled = jnp.sum(x_ref[...], axis=1, dtype=jnp.float32)  # (TB, C)
    # nn.Linear: pooled @ W^T + b  (bf16 MXU matmul, f32 accumulation).
    o_ref[...] = (
        jnp.dot(pooled.astype(jnp.bfloat16), w_ref[...],
                preferred_element_type=jnp.float32)
        + b_ref[...]
    )


def _pick_batch_tile(B, S, C, E_pad, vmem_budget, prefer_two_steps):
    """Largest batch tile whose double-buffered blocks fit the VMEM budget."""
    # Padded VMEM footprint of one image of the (TB, S, C) bf16 block plus its
    # share of the (TB, E_pad) f32 output block (both double-buffered).
    per_image = (_round_up(S, _BF16_SUBLANE) * _round_up(C, _LANE) * 2
                 + E_pad * 4)
    fixed = (_round_up(C, _BF16_SUBLANE) * E_pad * 2   # weight (single buffer)
             + 2 * 8 * E_pad * 4)                      # bias (padded, 2 bufs)
    tb_cap = max(1, (vmem_budget - fixed) // (2 * per_image))
    tb_cap = int(min(tb_cap, 256))
    if prefer_two_steps and B >= 16:
        # v7x megacore: leave >= 2 grid steps so both TensorCores get work.
        tb_cap = min(tb_cap, -(-B // 2))
    if B <= tb_cap:
        return B  # single grid step; block == full (padded) batch
    # Multi-step: keep TB a multiple of 8 so the (TB, E_pad) output block is
    # sublane-aligned; the batch is zero-padded up to a multiple of TB.
    return max(8, (tb_cap // 8) * 8)


def make_encoder_cnn_head(weight, bias, spatial_size):
    """Build the EncoderCNN head forward: avgpool(1,1) -> view -> Linear.

    weight: (E, C) f32 -- nn.Linear weight (PyTorch layout)
    bias:   (E,)   f32 -- nn.Linear bias
    spatial_size: H*W of the backbone's final feature map (49 for 224x224 input)
    Returns a jitted forward(feats, data_format=...) over the feature map.
    """
    E, C = weight.shape
    E_pad = _round_up(E, _LANE)

    # One-time weight prep (hoisted out of the per-call path): transpose, fold
    # the 1/S pooling scale, pad the embed dim to a lane multiple, bf16 cast.
    w_t = weight.T.astype(jnp.float32) * (1.0 / float(spatial_size))
    w_t = jnp.pad(w_t, ((0, 0), (0, E_pad - E))).astype(jnp.bfloat16)
    b2 = jnp.pad(bias.astype(jnp.float32), (0, E_pad - E)).reshape(1, E_pad)

    vmem_cap = _vmem_capacity_bytes()
    vmem_budget = int(vmem_cap * 0.5)           # tile-sizing budget
    vmem_limit = int(vmem_cap * 0.7)            # hard compiler limit w/ headroom
    prefer_two_steps = vmem_cap <= 64 * 1024 * 1024   # v7x (2 TC/chip) heuristic

    @functools.partial(jax.jit, static_argnames=("data_format",))
    def forward(feats, data_format="NCHW"):
        if data_format == "NCHW":        # PyTorch backbone layout
            B, Cf, H, W = feats.shape
            x = jnp.transpose(feats, (0, 2, 3, 1))   # -> NHWC (lane-dense C)
        else:                            # "NHWC": free if backbone is channels-last
            B, H, W, Cf = feats.shape
            x = feats
        assert Cf == C and H * W == spatial_size
        S = H * W
        # bf16 halves the HBM read that dominates this kernel; channels on
        # lanes keeps vregs dense and DMA rows contiguous.
        x = x.reshape(B, S, C).astype(jnp.bfloat16)

        TB = _pick_batch_tile(B, S, C, E_pad, vmem_budget, prefer_two_steps)
        B_pad = _round_up(B, TB)
        if B_pad != B:
            x = jnp.pad(x, ((0, B_pad - B), (0, 0), (0, 0)))

        out = pl.pallas_call(
            _encoder_head_kernel,
            out_shape=jax.ShapeDtypeStruct((B_pad, E_pad), jnp.float32),
            grid=(B_pad // TB,),
            in_specs=[
                pl.BlockSpec((TB, S, C), lambda i: (i, 0, 0)),
                _const_spec((C, E_pad), lambda i: (0, 0)),   # fetched once
                _const_spec((1, E_pad), lambda i: (0, 0)),   # fetched once
            ],
            out_specs=pl.BlockSpec((TB, E_pad), lambda i: (i, 0)),
            compiler_params=pltpu.CompilerParams(
                dimension_semantics=("parallel",),
                vmem_limit_bytes=vmem_limit,
            ),
        )(x, w_t, b2)

        # Drop batch and lane padding.
        return out[:B, :E]

    return forward


def _reference(feats_nchw, weight, bias):
    pooled = jnp.mean(feats_nchw.astype(jnp.float32), axis=(2, 3))  # avgpool + view
    return pooled @ weight.T + bias                                  # nn.Linear


if __name__ == "__main__":
    # Small shapes standing in for ResNet-50's real ones
    # (real: C=2048 channels, 7x7 spatial for 224x224 input).
    B, C, H, W = 2, 128, 4, 4
    EMBED_SIZE = 64

    key = jax.random.PRNGKey(0)
    k_x, k_w, k_b = jax.random.split(key, 3)

    # Backbone output feature map (input to this kernel), NCHW like PyTorch.
    feats = jax.random.normal(k_x, (B, C, H, W), dtype=jnp.float32)

    # Deterministic nn.Linear(in_features=C, out_features=EMBED_SIZE) init
    # (PyTorch default: U(-1/sqrt(C), 1/sqrt(C)) for both weight and bias).
    bound = 1.0 / (C ** 0.5)
    weight = jax.random.uniform(
        k_w, (EMBED_SIZE, C), minval=-bound, maxval=bound, dtype=jnp.float32
    )
    bias = jax.random.uniform(
        k_b, (EMBED_SIZE,), minval=-bound, maxval=bound, dtype=jnp.float32
    )

    forward = make_encoder_cnn_head(weight, bias, spatial_size=H * W)
    out = jax.block_until_ready(forward(feats))

    ref = _reference(feats, weight, bias)
    assert out.shape == (B, EMBED_SIZE), out.shape
    assert out.dtype == jnp.float32, out.dtype
    # Feature map / weight are read as bf16 -> compare at bf16-level tolerance.
    assert jnp.allclose(out, ref, atol=1e-2, rtol=1e-2), float(
        jnp.max(jnp.abs(out - ref))
    )

    print("KERNEL_OK")
</pallas_src>

<mosaic_0001>
module attributes {stable_mosaic.version = 11 : i64} {
  func.func @_encoder_head_kernel(%arg0: i32, %arg1: memref<2x16x128xbf16, #tpu.memory_space<vmem>>, %arg2: memref<128x128xbf16, #tpu.memory_space<vmem>>, %arg3: memref<1x128xf32, #tpu.memory_space<vmem>>, %arg4: memref<2x128xf32, #tpu.memory_space<vmem>>) attributes {dimension_semantics = [#tpu.dimension_semantics<parallel>], iteration_bounds = array<i64: 1>, scalar_prefetch = 0 : i64, scratch_operands = 0 : i64, tpu.core_type = #tpu.core_type<tc>, window_params = [{transform_indices = @transform_0, window_bounds = array<i64: 2, 16, 128>}, {pipeline_mode = #tpu.pipeline_mode<synchronous>, transform_indices = @transform_1, window_bounds = array<i64: 128, 128>}, {pipeline_mode = #tpu.pipeline_mode<synchronous>, transform_indices = @transform_2, window_bounds = array<i64: 1, 128>}, {transform_indices = @transform_3, window_bounds = array<i64: 2, 128>}]} {
    %c0 = arith.constant 0 : index
    %c0_0 = arith.constant 0 : index
    %c0_1 = arith.constant 0 : index
    %0 = vector.load %arg1[%c0, %c0_0, %c0_1] : memref<2x16x128xbf16, #tpu.memory_space<vmem>>, vector<2x16x128xbf16>
    %1 = arith.extf %0 : vector<2x16x128xbf16> to vector<2x16x128xf32>
    %cst = arith.constant dense<0.000000e+00> : vector<2x128xf32>
    %2 = vector.multi_reduction <add>, %1, %cst [1] : vector<2x16x128xf32> to vector<2x128xf32>
    %3 = arith.truncf %2 : vector<2x128xf32> to vector<2x128xbf16>
    %c0_2 = arith.constant 0 : index
    %c0_3 = arith.constant 0 : index
    %4 = vector.load %arg2[%c0_2, %c0_3] : memref<128x128xbf16, #tpu.memory_space<vmem>>, vector<128x128xbf16>
    %cst_4 = arith.constant dense<0.000000e+00> : vector<2x128xf32>
    %5 = tpu.matmul %3, %4, %cst_4 {dimension_numbers = #tpu.dot_dimension_numbers<[1], [0], [0], [1], [0, 0, 1, 1], [], []>} : vector<2x128xbf16>, vector<128x128xbf16>, vector<2x128xf32> -> vector<2x128xf32>
    %c0_5 = arith.constant 0 : index
    %c0_6 = arith.constant 0 : index
    %6 = vector.load %arg3[%c0_5, %c0_6] : memref<1x128xf32, #tpu.memory_space<vmem>>, vector<1x128xf32>
    %7 = vector.broadcast %6 : vector<1x128xf32> to vector<2x128xf32>
    %8 = arith.addf %5, %7 : vector<2x128xf32>
    %c0_7 = arith.constant 0 : index
    %c0_8 = arith.constant 0 : index
    %9 = vector.load %arg4[%c0_7, %c0_8] : memref<2x128xf32, #tpu.memory_space<vmem>>, vector<2x128xf32>
    tpu.vector_store %arg4[%c0_7, %c0_8], %8 {strides = array<i32>} : memref<2x128xf32, #tpu.memory_space<vmem>>, vector<2x128xf32>,
    return
  }
  func.func @transform_0(%arg0: i32) -> (i32, i32, i32) {
    %c0_i32 = arith.constant 0 : i32
    %c0_i32_0 = arith.constant 0 : i32
    %c0_i32_1 = arith.constant 0 : i32
    return %arg0, %c0_i32, %c0_i32_0 : i32, i32, i32
  }
  func.func @transform_1(%arg0: i32) -> (i32, i32) {
    %c0_i32 = arith.constant 0 : i32
    %c0_i32_0 = arith.constant 0 : i32
    %c0_i32_1 = arith.constant 0 : i32
    return %c0_i32, %c0_i32_0 : i32, i32
  }
  func.func @transform_2(%arg0: i32) -> (i32, i32) {
    %c0_i32 = arith.constant 0 : i32
    %c0_i32_0 = arith.constant 0 : i32
    %c0_i32_1 = arith.constant 0 : i32
    return %c0_i32, %c0_i32_0 : i32, i32
  }
  func.func @transform_3(%arg0: i32) -> (i32, i32) {
    %c0_i32 = arith.constant 0 : i32
    %c0_i32_0 = arith.constant 0 : i32
    return %arg0, %c0_i32 : i32, i32
  }
}

</mosaic_0001>

<bundles_post_ra>
// kernel: forward.1
= control target key start
LH: loop header
LB: loop body
LE: loop exit
PB: predicated region body
PF: predicated region fallthrough
CT: control target
= control target key end

     0   :  { %8 = vsyncpa [#allocation3], 0  ;;  %s357_s0 = inlined_call_operand.vmem [shape: bf16[2,16,128], index: 0, kind: input, shape index: {}]   ;;  %s358_s1 = inlined_call_operand.hbm [shape: bf16[128,128], index: 1, kind: input, shape index: {}]   ;;  %s359_s2 = inlined_call_operand.vmem [shape: f32[1,128], index: 2, kind: input, shape index: {}]   ;;  %s360_s3 = inlined_call_operand.hbm [shape: f32[2,128], index: 3, kind: output, shape index: {}]  }
   0x1   :  { %9 = vsyncpa [#allocation4], 0  ;;  %s298_s12 = smov [#allocation2]   ;;  %s250_s16 = scalar_lea.hbm %s358_s1, 1024 }
   0x2   :  { %s17_s13 = sshll.u32 %s298_s12, 4  ;;  %p251_p0 = scmp.ne.s32.totalorder %s358_s1, %s250_s16  ;;  %s18_s13 = int_to_ptr.vmem [resolvable:$true] %s17_s13 }
   0x3   :  { %p254_p1 = scmp.lt.u32.totalorder %s250_s16, %s358_s1 }
   0x5   :  { %p256_p2 = pnand %p254_p1, %p251_p0 }
   0x7   :  { %259 = shalt.err (!%p256_p2)
}
   0x8   :  { %s260_s21 = scalar_lea.vmem %s18_s13, 1024  ;;  %p265_p4 = scmp.lt.s32.totalorder %s18_s13, %s18_s13 }
   0x9   :  { %p261_p3 = scmp.ne.s32.totalorder %s18_s13, %s260_s21  ;;  %p266_p5 = scmp.lt.s32.totalorder %s260_s21, %s260_s21 }
   0xb   :  { %p267_p6 = por %p266_p5, %p265_p4 }
   0xd   :  { %p268_p7 = pnand %p267_p6, %p261_p3 }
   0xf   :  { %271 = shalt.err (!%p268_p7)
}
  0x10   :  { %s299_s22 = smov 64   ;;  %s300_s23 = smov 4  }
  0x11   :  { %23 = dma.hbm_to_vmem [thread:$0]  %s358_s1, 1024, %s18_s13, [#allocation3], %s299_s22, %s299_s22, %s300_s23  }
  0x12   :  { %294 = dma.done.wait [#allocation3], 1024  }
  0x13   :  { %295 = vsyncadd [#allocation3], 4294966272  ;;  %v301_v0 = vmov 0.0   ;;  %vm302_vm0 = vmmov 0   ;;  %v242_v1 = vld [vmem:[#allocation2] sm:$0xff]   ;;  %v243_v2 = vld [vmem:[#allocation2 + $0x8] sm:$0xff]  }
  0x14   :  { %216 = vmatprep.subr.bf16.mxu0 %v301_v0  ;;  %232 = vmatprep.mubr.msk.bf16.mxu0 %vm302_vm0, %v301_v0  ;;  %v244_v3 = vld [vmem:[#allocation2 + $0x10] sm:$0xff]   ;;  %v199_v4 = vld [vmem:[%s357_s0] sm:$0xff]   ;;  %v206_v5 = vld [vmem:[%s357_s0 + $0x8] sm:$0xff]   ;;  %vm81_vm1 = vcmask 1041409   ;;  %s303_s30 = smov [#allocation5]  }
  0x15   :  { %217 = vmatpush3.bf16.msra.mxu0 %v242_v1  ;;  %v200_v6 = vunpack.c.l.bf16 %v199_v4  ;;  %v201_v7 = vunpack.c.h.bf16 %v199_v4  ;;  %v204_v8 = vunpack.c.l.bf16 %v206_v5  ;;  %v205_v9 = vunpack.c.h.bf16 %v206_v5  ;;  %v245_v10 = vld [vmem:[#allocation2 + $0x18] sm:$0xff]   ;;  %v246_v15 = vld [vmem:[#allocation2 + $0x20] sm:$0xff]   ;;  %v247_v20 = vld [vmem:[#allocation2 + $0x28] sm:$0xff]   ;;  %s180_s4 = sshll.u32 %s303_s30, 4  ;;  %s181_s4 = int_to_ptr.vmem [resolvable:$true] %s180_s4 }
  0x16   :  { %218 = vmatprep.subr.bf16.mxu0 %v301_v0  ;;  %v248_v25 = vld [vmem:[#allocation2 + $0x30] sm:$0xff]   ;;  %v249_v30 = vld [vmem:[#allocation2 + $0x38] sm:$0xff]   ;;  %v189_v35 = vld [vmem:[%s359_s2] ss:$0 sm:$0xff]  ;;  %s272_s5 = scalar_lea.vmem %s181_s4, 32  ;;  %p277_p9 = scmp.lt.s32.totalorder %s181_s4, %s181_s4 }
  0x17   :  { %v38_v11 = vadd.f32 %v201_v7, %v200_v6  ;;  %v45_v12 = vadd.f32 %v205_v9, %v204_v8  ;;  %p273_p8 = scmp.ne.s32.totalorder %s181_s4, %s272_s5  ;;  %p278_p10 = scmp.lt.s32.totalorder %s272_s5, %s272_s5 }
  0x19   :  { %219 = vmatpush3.bf16.msra.mxu0 %v243_v2  ;;  %v39_v13 = vrot.slane %v38_v11, 4  ;;  %v46_v14 = vrot.slane %v45_v12, 4  ;;  %p279_p11 = por %p278_p10, %p277_p9 }
  0x1a   :  { %220 = vmatprep.subr.bf16.mxu0 %v301_v0 }
  0x1b   :  { %v40_v16 = vadd.f32 %v39_v13, %v38_v11  ;;  %v47_v17 = vadd.f32 %v46_v14, %v45_v12  ;;  %p280_p12 = pnand %p279_p11, %p273_p8 }
  0x1d   :  { %221 = vmatpush3.bf16.msra.mxu0 %v244_v3  ;;  %v41_v18 = vrot.slane %v40_v16, 2  ;;  %v48_v19 = vrot.slane %v47_v17, 2 }
  0x1e   :  { %222 = vmatprep.subr.bf16.mxu0 %v301_v0 }
  0x1f   :  { %v42_v21 = vadd.f32 %v41_v18, %v40_v16  ;;  %v49_v22 = vadd.f32 %v48_v19, %v47_v17 }
  0x21   :  { %223 = vmatpush3.bf16.msra.mxu0 %v245_v10  ;;  %v43_v23 = vrot.slane %v42_v21, 1  ;;  %v50_v24 = vrot.slane %v49_v22, 1 }
  0x22   :  { %224 = vmatprep.subr.bf16.mxu0 %v301_v0 }
  0x23   :  { %v44_v26 = vadd.f32 %v43_v23, %v42_v21  ;;  %v51_v27 = vadd.f32 %v50_v24, %v49_v22 }
  0x25   :  { %225 = vmatpush3.bf16.msra.mxu0 %v246_v15  ;;  %v52_v28 = vpack.c.bf16 %v44_v26, %v44_v26  ;;  %v53_v29 = vpack.c.bf16 %v51_v27, %v51_v27 }
  0x26   :  { %226 = vmatprep.subr.bf16.mxu0 %v301_v0 }
  0x27   :  { %v79_v31 = vunpack.c.l.b16 %v52_v28  ;;  %v80_v32 = vunpack.c.l.b16 %v53_v29 }
  0x29   :  { %227 = vmatpush3.bf16.msra.mxu0 %v247_v20  ;;  %v82_v33 = vsel %vm81_vm1, %v80_v32, %v79_v31 }
  0x2a   :  { %228 = vmatprep.subr.bf16.mxu0 %v301_v0  ;;  %v83_v34 = vpack.c.b16 %v82_v33, %v82_v33 }
  0x2d   :  { %229 = vmatpush3.bf16.msra.mxu0 %v248_v25 }
  0x2e   :  { %230 = vmatprep.subr.bf16.mxu0 %v301_v0 }
  0x31   :  { %231 = vmatpush3.bf16.msra.mxu0 %v249_v30 }
  0x34   :  { %233 = vmatmul.mubr.bf16.vlgmr.msra.gmra.mrb[0].mxu0 %v83_v34 }
 0x107   :  { %v167_v36 = vpop.f32.mrb[0].mxu0 }
 0x108   :  { %v168_v37 = vadd.f32 %v189_v35, %v167_v36  ;;  %v234_v38 = vpop.f32.mrb[1].mxu0 }
 0x109   :  { %v170_v39 = vpop.f32.mrb[2].mxu0 }
 0x10a   :  { %173 = vst [vmem:[#allocation5] sm:$0x3] %v168_v37  ;;  %v235_v40 = vpop.f32.mrb[3].mxu0 }
 0x10b   :  { %283 = shalt.err (!%p280_p12)
}
 0x10c   :  { %s284_s2 = scalar_lea.hbm %s360_s3, 32 }
 0x10d   :  { %p285_p13 = scmp.ne.s32.totalorder %s360_s3, %s284_s2  ;;  %p288_p0 = scmp.lt.u32.totalorder %s284_s2, %s360_s3 }
 0x10f   :  { %p290_p1 = pnand %p288_p0, %p285_p13 }
 0x111   :  { %293 = shalt.err (!%p290_p1)
}
 0x112   :  { %183 = dma.vmem_to_hbm [thread:$0]  %s181_s4, 32, %s360_s3, [#allocation4]  }
 0x113   :  { %296 = dma.done.wait [#allocation4], 32  }
 0x114   :  { %297 = vsyncadd [#allocation4], 4294967264 }
 0x115   :  { %187 = vsyncpa [#allocation3], 1 }
 0x116   :  { %188 = vsyncpa [#allocation4], 1 }

</bundles_post_ra>
